<compile_context>
chip_gen: v7x
topology: tpu7x:2x2x1
jax: 0.10.0
libtpu: 0.0.40
codegen_flags: <defaults>
</compile_context>

<pallas_src>
import functools
import math

import jax
import jax.numpy as jnp
from jax.experimental import pallas as pl
from jax.experimental.pallas import tpu as pltpu


_VMEM_LIMIT_BYTES = 32 * 1024 * 1024      # explicit scoped-VMEM budget (safe on v5e/v6e/v7x)
_TARGET_BLOCK_BYTES = 4 * 1024 * 1024     # per-block target -> <=16 MiB of double buffers


# ----------------------------------------------------------------------------
# Tile-size helpers (pure Python, trace time only)
# ----------------------------------------------------------------------------
def _divisor_tiles(n, max_elems):
    """Divisors of n that are multiples of 128 and <= max_elems, descending."""
    out = set()
    d = 1
    while d * d <= n:
        if n % d == 0:
            for c in (d, n // d):
                if c % 128 == 0 and c <= max_elems:
                    out.add(c)
        d += 1
    return sorted(out, reverse=True)


def _pick_hw_tile(h2w, hw, c, itemsize):
    """Lane-aligned spatial tile that divides both halves, or None (fallback)."""
    bot = hw - h2w
    if h2w <= 0 or bot <= 0:
        return None
    g = math.gcd(h2w, bot)
    max_elems = max(128, _TARGET_BLOCK_BYTES // max(1, c * itemsize))
    cands = _divisor_tiles(g, max_elems)
    return cands[0] if cands else None


def _pick_gate_tile(hw, c, itemsize):
    """Lane-aligned spatial tile dividing HW, or the full HW if none exists."""
    max_elems = max(128, _TARGET_BLOCK_BYTES // max(1, c * itemsize))
    cands = _divisor_tiles(hw, max_elems)
    return cands[0] if cands else hw


def _pick_batch_block(n, c, tile_hw, itemsize, target_bytes=512 * 1024):
    """Samples per grid step for the gate kernel: amortize per-step overhead on
    small feature maps, but keep >= 2 blocks along N so both v7x TCs get work."""
    per_sample = max(1, c * tile_hw * itemsize)
    want = max(1, target_bytes // per_sample)
    best = 1
    for nb in range(1, n + 1):
        if n % nb == 0 and nb <= want and (n // nb >= 2 or n == 1):
            best = nb
    return best


# ----------------------------------------------------------------------------
# Kernel 1: streaming per-(n, c) spatial stats (max/sum of top & bottom halves)
# ----------------------------------------------------------------------------
def _pool_stats_tiled_kernel(x_ref, out_ref, acc_ref, *, n_top_tiles):
    """Accumulate per-channel stats over lane-aligned spatial tiles.

    x_ref   : (1, C, tile_hw)  current spatial tile of one sample (native dtype)
    out_ref : (1, 4, C)        rows = [max_top, max_bot, sum_top, sum_bot] (f32)
    acc_ref : (4, C) f32       VMEM accumulator, resident across the tile axis
    """
    t = pl.program_id(1)
    nt = pl.num_programs(1)

    @pl.when(t == 0)
    def _init():
        ninf = jnp.full(acc_ref.shape[1:], -jnp.inf, dtype=jnp.float32)
        zero = jnp.zeros(acc_ref.shape[1:], dtype=jnp.float32)
        acc_ref[0] = ninf
        acc_ref[1] = ninf
        acc_ref[2] = zero
        acc_ref[3] = zero

    x = x_ref[0]                                              # (C, tile_hw)
    # Single traversal per element: one max (native dtype) + one f32 add.
    tile_max = jnp.max(x, axis=-1).astype(jnp.float32)        # (C,)
    tile_sum = jnp.sum(x.astype(jnp.float32), axis=-1)        # (C,)

    @pl.when(t < n_top_tiles)
    def _top():
        acc_ref[0] = jnp.maximum(acc_ref[0], tile_max)
        acc_ref[2] = acc_ref[2] + tile_sum

    @pl.when(t >= n_top_tiles)
    def _bottom():
        acc_ref[1] = jnp.maximum(acc_ref[1], tile_max)
        acc_ref[3] = acc_ref[3] + tile_sum

    @pl.when(t == nt - 1)
    def _finalize():
        out_ref[...] = jnp.stack(
            [acc_ref[0], acc_ref[1], acc_ref[2], acc_ref[3]], axis=0)[None]


def _pool_stats_whole_kernel(x_ref, out_ref, *, h2w):
    """Fallback (no lane-aligned tile divides both halves): one block per sample,
    still a single traversal per half. For realistic CNN feature maps this block
    is at most a few MiB, so it always fits the VMEM budget."""
    x = x_ref[0]                                              # (C, HW)
    x_top = x[:, :h2w]
    x_bot = x[:, h2w:]
    max_top = jnp.max(x_top, axis=-1).astype(jnp.float32)
    max_bot = jnp.max(x_bot, axis=-1).astype(jnp.float32)
    sum_top = jnp.sum(x_top.astype(jnp.float32), axis=-1)
    sum_bot = jnp.sum(x_bot.astype(jnp.float32), axis=-1)
    out_ref[...] = jnp.stack([max_top, max_bot, sum_top, sum_bot], axis=0)[None]


# ----------------------------------------------------------------------------
# Kernel 2: streaming gate multiply (gate broadcast along lanes)
# ----------------------------------------------------------------------------
def _gate_mul_kernel(x_ref, g_ref, o_ref):
    """out = x * gate, gate is (Nb, C, 1): C on sublanes, broadcast along lanes.
    Multiply runs in the input dtype (bf16 stays bf16; f32 stays f32)."""
    o_ref[...] = x_ref[...] * g_ref[...].astype(o_ref.dtype)


# ----------------------------------------------------------------------------
# Plain-JAX glue: BatchNorm2d (training mode) over the batch on tiny (N, C)
# ----------------------------------------------------------------------------
def _batchnorm2d_train(z, gamma, beta, eps=1e-5):
    # nn.BatchNorm2d(C) applied to (N, C, 1, 1) in training mode: per-channel
    # normalization over the batch with biased variance. z: (N, C).
    mean = jnp.mean(z, axis=0, keepdims=True)
    var = jnp.mean((z - mean) ** 2, axis=0, keepdims=True)
    return gamma[None, :] * (z - mean) / jnp.sqrt(var + eps) + beta[None, :]


def init_msa_pooling_params(key, nchannels, dtype=jnp.float32):
    # Shapes follow MSAPooling.__init__: four (C, 3) cfc params + BatchNorm2d(C).
    # Deterministic random values instead of fill_(0)/fill_(1) so the compute
    # path is non-degenerate; BN affine keeps the PyTorch default (gamma=1, beta=0).
    k0, k1, k2, k3 = jax.random.split(key, 4)
    return {
        "cfc":     0.5 * jax.random.normal(k0, (nchannels, 3), dtype),
        "cfc_avg": 0.5 * jax.random.normal(k1, (nchannels, 3), dtype),
        "cfc_max": 0.5 * jax.random.normal(k2, (nchannels, 3), dtype),
        "cfc_std": 0.5 * jax.random.normal(k3, (nchannels, 3), dtype),
        "bn_gamma": jnp.ones((nchannels,), dtype),
        "bn_beta":  jnp.zeros((nchannels,), dtype),
    }


# ----------------------------------------------------------------------------
# Forward
# ----------------------------------------------------------------------------
def msa_pooling_forward(x, params):
    N, C, H, W = x.shape
    HW = H * W
    h2w = (H // 2) * W
    itemsize = x.dtype.itemsize
    xf = x.reshape(N, C, HW)

    # ---- Kernel 1: per-(n, c) raw stats over the spatial axis ---------------
    tile_hw = _pick_hw_tile(h2w, HW, C, itemsize)
    if tile_hw is not None:
        n_tiles = HW // tile_hw
        n_top_tiles = h2w // tile_hw
        stats = pl.pallas_call(
            functools.partial(_pool_stats_tiled_kernel, n_top_tiles=n_top_tiles),
            out_shape=jax.ShapeDtypeStruct((N, 4, C), jnp.float32),
            grid=(N, n_tiles),
            in_specs=[pl.BlockSpec((1, C, tile_hw), lambda n, t: (n, 0, t))],
            out_specs=pl.BlockSpec((1, 4, C), lambda n, t: (n, 0, 0)),
            scratch_shapes=[pltpu.VMEM((4, C), jnp.float32)],
            compiler_params=pltpu.CompilerParams(
                dimension_semantics=("parallel", "arbitrary"),
                vmem_limit_bytes=_VMEM_LIMIT_BYTES),
        )(xf)
    else:
        # TODO(synk): if C*HW ever exceeds the VMEM budget AND no lane-aligned
        # tile divides both halves, a masked tiled variant would be needed.
        stats = pl.pallas_call(
            functools.partial(_pool_stats_whole_kernel, h2w=h2w),
            out_shape=jax.ShapeDtypeStruct((N, 4, C), jnp.float32),
            grid=(N,),
            in_specs=[pl.BlockSpec((1, C, HW), lambda n: (n, 0, 0))],
            out_specs=pl.BlockSpec((1, 4, C), lambda n: (n, 0, 0)),
            compiler_params=pltpu.CompilerParams(
                dimension_semantics=("parallel",),
                vmem_limit_bytes=_VMEM_LIMIT_BYTES),
        )(xf)

    max_top, max_bot = stats[:, 0], stats[:, 1]
    sum_top, sum_bot = stats[:, 2], stats[:, 3]

    max_all = jnp.maximum(max_top, max_bot)
    mean_all = (sum_top + sum_bot) * (1.0 / HW)
    mean_up = sum_top * (1.0 / h2w)
    mean_bot = sum_bot * (1.0 / (HW - h2w))
    max_up = max_top
    max_bottom = max_top     # PyTorch quirk: "max_bottom" is also taken from the top half.

    cfc_max = params["cfc_max"].astype(jnp.float32)
    cfc_avg = params["cfc_avg"].astype(jnp.float32)
    cfc_std = params["cfc_std"].astype(jnp.float32)
    z_max = max_all * cfc_max[:, 0] + max_up * cfc_max[:, 1] + max_bottom * cfc_max[:, 2]
    z_avg = mean_all * cfc_avg[:, 0] + mean_up * cfc_avg[:, 1] + mean_bot * cfc_avg[:, 2]
    # PyTorch quirk: cfc_std is applied to avg_t (std stats are never used).
    z_std = mean_all * cfc_std[:, 0] + mean_up * cfc_std[:, 1] + mean_bot * cfc_std[:, 2]

    gamma = params["bn_gamma"].astype(jnp.float32)
    beta = params["bn_beta"].astype(jnp.float32)
    max_v = _batchnorm2d_train(z_max, gamma, beta)
    avg_v = _batchnorm2d_train(z_avg, gamma, beta)
    std_v = _batchnorm2d_train(z_std, gamma, beta)

    cfc = params["cfc"].astype(jnp.float32)
    z_fuse = max_v * cfc[:, 0] + avg_v * cfc[:, 1] + std_v * cfc[:, 2]
    fuse_v = _batchnorm2d_train(z_fuse, gamma, beta)          # (N, C)

    # Sigmoid on the tiny (N, C) tensor; gate laid out (N, C, 1): C on sublanes.
    gate = jax.nn.sigmoid(fuse_v).reshape(N, C, 1)

    # ---- Kernel 2: streaming gate multiply ----------------------------------
    tile_g = _pick_gate_tile(HW, C, itemsize)
    nb = _pick_batch_block(N, C, tile_g, itemsize)
    out_flat = pl.pallas_call(
        _gate_mul_kernel,
        out_shape=jax.ShapeDtypeStruct((N, C, HW), x.dtype),
        grid=(N // nb, HW // tile_g),
        in_specs=[
            pl.BlockSpec((nb, C, tile_g), lambda n, t: (n, 0, t)),
            pl.BlockSpec((nb, C, 1), lambda n, t: (n, 0, 0)),
        ],
        out_specs=pl.BlockSpec((nb, C, tile_g), lambda n, t: (n, 0, t)),
        compiler_params=pltpu.CompilerParams(
            dimension_semantics=("parallel", "parallel"),
            vmem_limit_bytes=_VMEM_LIMIT_BYTES),
    )(xf, gate)
    return out_flat.reshape(N, C, H, W)


# ----------------------------------------------------------------------------
# Pure-JAX reference (mirrors the PyTorch forward, including its quirks)
# ----------------------------------------------------------------------------
def msa_pooling_reference(x, params):
    N, C, H, W = x.shape
    xf = x.reshape(N, C, -1).astype(jnp.float32)
    x1 = x[:, :, :H // 2, :].reshape(N, C, -1).astype(jnp.float32)
    x2 = x[:, :, H // 2:, :].reshape(N, C, -1).astype(jnp.float32)

    max_t = jnp.stack([xf.max(-1), x1.max(-1), x1.max(-1)], axis=-1)       # (N,C,3)
    avg_t = jnp.stack([xf.mean(-1), x1.mean(-1), x2.mean(-1)], axis=-1)    # (N,C,3)

    gamma = params["bn_gamma"].astype(jnp.float32)
    beta = params["bn_beta"].astype(jnp.float32)
    bn = lambda z: _batchnorm2d_train(z, gamma, beta)

    max_v = bn(jnp.sum(max_t * params["cfc_max"][None], axis=-1))
    avg_v = bn(jnp.sum(avg_t * params["cfc_avg"][None], axis=-1))
    std_v = bn(jnp.sum(avg_t * params["cfc_std"][None], axis=-1))          # avg_t (bug)
    t = jnp.stack([max_v, avg_v, std_v], axis=-1)
    fuse_v = bn(jnp.sum(t * params["cfc"][None], axis=-1))
    g = jax.nn.sigmoid(fuse_v)
    return x * g[:, :, None, None]


if __name__ == "__main__":
    key = jax.random.PRNGKey(0)
    kx, kp = jax.random.split(key)
    N, C, H, W = 2, 4, 16, 16
    x = jax.random.normal(kx, (N, C, H, W), jnp.float32)
    params = init_msa_pooling_params(kp, C)

    out = jax.block_until_ready(msa_pooling_forward(x, params))
    ref = msa_pooling_reference(x, params)

    assert out.shape == (N, C, H, W)
    max_err = float(jnp.max(jnp.abs(out - ref)))
    assert jnp.allclose(out, ref, rtol=1e-5, atol=1e-5), max_err
    print("KERNEL_OK")
</pallas_src>

<mosaic_0001>
module attributes {stable_mosaic.version = 11 : i64} {
  func.func @_pool_stats_tiled_kernel(%arg0: i32, %arg1: i32, %arg2: memref<1x4x128xf32, #tpu.memory_space<vmem>>, %arg3: memref<1x4x4xf32, #tpu.memory_space<vmem>>, %arg4: memref<4x4xf32, #tpu.memory_space<vmem>>) attributes {dimension_semantics = [#tpu.dimension_semantics<parallel>, #tpu.dimension_semantics<arbitrary>], iteration_bounds = array<i64: 2, 2>, scalar_prefetch = 0 : i64, scratch_operands = 1 : i64, tpu.core_type = #tpu.core_type<tc>, window_params = [{transform_indices = @transform_0, window_bounds = array<i64: 1, 4, 128>}, {transform_indices = @transform_1, window_bounds = array<i64: 1, 4, 4>}]} {
    %c0_i32 = arith.constant 0 : i32
    %0 = arith.cmpi eq, %arg1, %c0_i32 : i32
    %1 = arith.extui %0 : i1 to i32
    %c0_i32_0 = arith.constant 0 : i32
    %2 = arith.cmpi ne, %1, %c0_i32_0 : i32
    scf.if %2 {
      %cst_9 = arith.constant 0xFF800000 : f32
      %16 = vector.broadcast %cst_9 : f32 to vector<4xf32>
      %cst_10 = arith.constant 0.000000e+00 : f32
      %17 = vector.broadcast %cst_10 : f32 to vector<4xf32>
      %c0_11 = arith.constant 0 : index
      %c0_12 = arith.constant 0 : index
      %18 = vector.load %arg4[%c0_11, %c0_12] : memref<4x4xf32, #tpu.memory_space<vmem>>, vector<1x4xf32>
      %19 = vector.shape_cast %18 : vector<1x4xf32> to vector<4xf32>
      %20 = vector.shape_cast %16 : vector<4xf32> to vector<1x4xf32>
      tpu.vector_store %arg4[%c0_11, %c0_12], %20 {strides = array<i32>} : memref<4x4xf32, #tpu.memory_space<vmem>>, vector<1x4xf32>,
      %c1 = arith.constant 1 : index
      %c0_13 = arith.constant 0 : index
      %21 = vector.load %arg4[%c1, %c0_13] : memref<4x4xf32, #tpu.memory_space<vmem>>, vector<1x4xf32>
      %22 = vector.shape_cast %21 : vector<1x4xf32> to vector<4xf32>
      %23 = vector.shape_cast %16 : vector<4xf32> to vector<1x4xf32>
      tpu.vector_store %arg4[%c1, %c0_13], %23 {strides = array<i32>} : memref<4x4xf32, #tpu.memory_space<vmem>>, vector<1x4xf32>,
      %c2 = arith.constant 2 : index
      %c0_14 = arith.constant 0 : index
      %24 = vector.load %arg4[%c2, %c0_14] : memref<4x4xf32, #tpu.memory_space<vmem>>, vector<1x4xf32>
      %25 = vector.shape_cast %24 : vector<1x4xf32> to vector<4xf32>
      %26 = vector.shape_cast %17 : vector<4xf32> to vector<1x4xf32>
      tpu.vector_store %arg4[%c2, %c0_14], %26 {strides = array<i32>} : memref<4x4xf32, #tpu.memory_space<vmem>>, vector<1x4xf32>,
      %c3 = arith.constant 3 : index
      %c0_15 = arith.constant 0 : index
      %27 = vector.load %arg4[%c3, %c0_15] : memref<4x4xf32, #tpu.memory_space<vmem>>, vector<1x4xf32>
      %28 = vector.shape_cast %27 : vector<1x4xf32> to vector<4xf32>
      %29 = vector.shape_cast %17 : vector<4xf32> to vector<1x4xf32>
      tpu.vector_store %arg4[%c3, %c0_15], %29 {strides = array<i32>} : memref<4x4xf32, #tpu.memory_space<vmem>>, vector<1x4xf32>,
    } else {
    }
    %c0 = arith.constant 0 : index
    %c0_1 = arith.constant 0 : index
    %c0_2 = arith.constant 0 : index
    %3 = vector.load %arg2[%c0, %c0_1, %c0_2] : memref<1x4x128xf32, #tpu.memory_space<vmem>>, vector<1x4x128xf32>
    %4 = vector.shape_cast %3 : vector<1x4x128xf32> to vector<4x128xf32>
    %cst = arith.constant dense<0xFF800000> : vector<4xf32>
    %5 = vector.multi_reduction <maximumf>, %4, %cst [1] : vector<4x128xf32> to vector<4xf32>
    %cst_3 = arith.constant dense<0.000000e+00> : vector<4xf32>
    %6 = vector.multi_reduction <add>, %4, %cst_3 [1] : vector<4x128xf32> to vector<4xf32>
    %c1_i32 = arith.constant 1 : i32
    %7 = arith.cmpi slt, %arg1, %c1_i32 : i32
    %8 = arith.extui %7 : i1 to i32
    %c0_i32_4 = arith.constant 0 : i32
    %9 = arith.cmpi ne, %8, %c0_i32_4 : i32
    scf.if %9 {
      %c0_9 = arith.constant 0 : index
      %c0_10 = arith.constant 0 : index
      %16 = vector.load %arg4[%c0_9, %c0_10] : memref<4x4xf32, #tpu.memory_space<vmem>>, vector<1x4xf32>
      %17 = vector.shape_cast %16 : vector<1x4xf32> to vector<4xf32>
      %18 = arith.maximumf %17, %5 : vector<4xf32>
      %c0_11 = arith.constant 0 : index
      %c0_12 = arith.constant 0 : index
      %19 = vector.load %arg4[%c0_11, %c0_12] : memref<4x4xf32, #tpu.memory_space<vmem>>, vector<1x4xf32>
      %20 = vector.shape_cast %19 : vector<1x4xf32> to vector<4xf32>
      %21 = vector.shape_cast %18 : vector<4xf32> to vector<1x4xf32>
      tpu.vector_store %arg4[%c0_11, %c0_12], %21 {strides = array<i32>} : memref<4x4xf32, #tpu.memory_space<vmem>>, vector<1x4xf32>,
      %c2 = arith.constant 2 : index
      %c0_13 = arith.constant 0 : index
      %22 = vector.load %arg4[%c2, %c0_13] : memref<4x4xf32, #tpu.memory_space<vmem>>, vector<1x4xf32>
      %23 = vector.shape_cast %22 : vector<1x4xf32> to vector<4xf32>
      %24 = arith.addf %23, %6 : vector<4xf32>
      %c2_14 = arith.constant 2 : index
      %c0_15 = arith.constant 0 : index
      %25 = vector.load %arg4[%c2_14, %c0_15] : memref<4x4xf32, #tpu.memory_space<vmem>>, vector<1x4xf32>
      %26 = vector.shape_cast %25 : vector<1x4xf32> to vector<4xf32>
      %27 = vector.shape_cast %24 : vector<4xf32> to vector<1x4xf32>
      tpu.vector_store %arg4[%c2_14, %c0_15], %27 {strides = array<i32>} : memref<4x4xf32, #tpu.memory_space<vmem>>, vector<1x4xf32>,
    } else {
    }
    %c1_i32_5 = arith.constant 1 : i32
    %10 = arith.cmpi sge, %arg1, %c1_i32_5 : i32
    %11 = arith.extui %10 : i1 to i32
    %c0_i32_6 = arith.constant 0 : i32
    %12 = arith.cmpi ne, %11, %c0_i32_6 : i32
    scf.if %12 {
      %c1 = arith.constant 1 : index
      %c0_9 = arith.constant 0 : index
      %16 = vector.load %arg4[%c1, %c0_9] : memref<4x4xf32, #tpu.memory_space<vmem>>, vector<1x4xf32>
      %17 = vector.shape_cast %16 : vector<1x4xf32> to vector<4xf32>
      %18 = arith.maximumf %17, %5 : vector<4xf32>
      %c1_10 = arith.constant 1 : index
      %c0_11 = arith.constant 0 : index
      %19 = vector.load %arg4[%c1_10, %c0_11] : memref<4x4xf32, #tpu.memory_space<vmem>>, vector<1x4xf32>
      %20 = vector.shape_cast %19 : vector<1x4xf32> to vector<4xf32>
      %21 = vector.shape_cast %18 : vector<4xf32> to vector<1x4xf32>
      tpu.vector_store %arg4[%c1_10, %c0_11], %21 {strides = array<i32>} : memref<4x4xf32, #tpu.memory_space<vmem>>, vector<1x4xf32>,
      %c3 = arith.constant 3 : index
      %c0_12 = arith.constant 0 : index
      %22 = vector.load %arg4[%c3, %c0_12] : memref<4x4xf32, #tpu.memory_space<vmem>>, vector<1x4xf32>
      %23 = vector.shape_cast %22 : vector<1x4xf32> to vector<4xf32>
      %24 = arith.addf %23, %6 : vector<4xf32>
      %c3_13 = arith.constant 3 : index
      %c0_14 = arith.constant 0 : index
      %25 = vector.load %arg4[%c3_13, %c0_14] : memref<4x4xf32, #tpu.memory_space<vmem>>, vector<1x4xf32>
      %26 = vector.shape_cast %25 : vector<1x4xf32> to vector<4xf32>
      %27 = vector.shape_cast %24 : vector<4xf32> to vector<1x4xf32>
      tpu.vector_store %arg4[%c3_13, %c0_14], %27 {strides = array<i32>} : memref<4x4xf32, #tpu.memory_space<vmem>>, vector<1x4xf32>,
    } else {
    }
    %c1_i32_7 = arith.constant 1 : i32
    %13 = arith.cmpi eq, %arg1, %c1_i32_7 : i32
    %14 = arith.extui %13 : i1 to i32
    %c0_i32_8 = arith.constant 0 : i32
    %15 = arith.cmpi ne, %14, %c0_i32_8 : i32
    scf.if %15 {
      %c0_9 = arith.constant 0 : index
      %c0_10 = arith.constant 0 : index
      %16 = vector.load %arg4[%c0_9, %c0_10] : memref<4x4xf32, #tpu.memory_space<vmem>>, vector<1x4xf32>
      %17 = vector.shape_cast %16 : vector<1x4xf32> to vector<4xf32>
      %c1 = arith.constant 1 : index
      %c0_11 = arith.constant 0 : index
      %18 = vector.load %arg4[%c1, %c0_11] : memref<4x4xf32, #tpu.memory_space<vmem>>, vector<1x4xf32>
      %19 = vector.shape_cast %18 : vector<1x4xf32> to vector<4xf32>
      %c2 = arith.constant 2 : index
      %c0_12 = arith.constant 0 : index
      %20 = vector.load %arg4[%c2, %c0_12] : memref<4x4xf32, #tpu.memory_space<vmem>>, vector<1x4xf32>
      %21 = vector.shape_cast %20 : vector<1x4xf32> to vector<4xf32>
      %c3 = arith.constant 3 : index
      %c0_13 = arith.constant 0 : index
      %22 = vector.load %arg4[%c3, %c0_13] : memref<4x4xf32, #tpu.memory_space<vmem>>, vector<1x4xf32>
      %23 = vector.shape_cast %22 : vector<1x4xf32> to vector<4xf32>
      %24 = vector.shape_cast %17 : vector<4xf32> to vector<1x4xf32>
      %25 = vector.shape_cast %19 : vector<4xf32> to vector<1x4xf32>
      %26 = vector.shape_cast %21 : vector<4xf32> to vector<1x4xf32>
      %27 = vector.shape_cast %23 : vector<4xf32> to vector<1x4xf32>
      %28 = tpu.concatenate %24, %25, %26, %27 in 0 : vector<1x4xf32>, vector<1x4xf32>, vector<1x4xf32>, vector<1x4xf32> -> vector<4x4xf32>
      %29 = vector.shape_cast %28 : vector<4x4xf32> to vector<1x4x4xf32>
      %c0_14 = arith.constant 0 : index
      %c0_15 = arith.constant 0 : index
      %c0_16 = arith.constant 0 : index
      %30 = vector.load %arg3[%c0_14, %c0_15, %c0_16] : memref<1x4x4xf32, #tpu.memory_space<vmem>>, vector<1x4x4xf32>
      tpu.vector_store %arg3[%c0_14, %c0_15, %c0_16], %29 {strides = array<i32>} : memref<1x4x4xf32, #tpu.memory_space<vmem>>, vector<1x4x4xf32>,
    } else {
    }
    return
  }
  func.func @transform_0(%arg0: i32, %arg1: i32) -> (i32, i32, i32) {
    %c0_i32 = arith.constant 0 : i32
    %c0_i32_0 = arith.constant 0 : i32
    return %arg0, %c0_i32, %arg1 : i32, i32, i32
  }
  func.func @transform_1(%arg0: i32, %arg1: i32) -> (i32, i32, i32) {
    %c0_i32 = arith.constant 0 : i32
    %c0_i32_0 = arith.constant 0 : i32
    %c0_i32_1 = arith.constant 0 : i32
    return %arg0, %c0_i32, %c0_i32_0 : i32, i32, i32
  }
}

</mosaic_0001>

<bundles_post_ra>
// kernel: tpu_custom_call.1
= control target key start
LH: loop header
LB: loop body
LE: loop exit
PB: predicated region body
PF: predicated region fallthrough
CT: control target
= control target key end

     0   :  { %6 = vsyncpa [#allocation4], 0  ;;  %s854_s0 = inlined_call_operand.hbm [shape: f32[2,4,256], index: 0, kind: input, shape index: {}]   ;;  %s855_s1 = inlined_call_operand.hbm [shape: f32[2,4,4], index: 1, kind: output, shape index: {}]  }
   0x1   :  { %8 = vsyncpa [#allocation4 + $0x1], 0 }
   0x2   :  { %9 = vsyncpa [#allocation5], 0 }
   0x3   :  { %11 = vsyncpa [#allocation5 + $0x1], 0  ;;  %s627_s6 = smov 0   ;;  %s629_s7 = smov 0  }
   0x4   :  { %s631_s8 = smov 0   ;;  %s633_s9 = smov 0  }
   0x5   :  { %s635_s10 = smov 0   ;;  %s637_s11 = smov 0  }
   0x6   :  { %s639_s12 = smov 0   ;;  %s641_s13 = smov 0  }
   0x7   :  { %s643_s14 = smov 0   ;;  %s645_s15 = smov 0  }
   0x8   :  { %s647_s16 = smov 0  }
   0x9 LB: > { %s337_s17 = sadd.s32 4294967295, %s611_s16   ;;  %s338_s18 = sadd.s32 4294967294, %s611_s16   ;;  %s611_s16 = sphi %s647_s16, %s17_s16   ;;  %s607_s15 = sphi %s645_s15, %s875_s15   ;;  %s603_s14 = sphi %s643_s14, %s874_s14   ;;  %s599_s13 = sphi %s641_s13, %s873_s13   ;;  %s595_s12 = sphi %s639_s12, %s872_s12   ;;  %s591_s11 = sphi %s637_s11, %s871_s11   ;;  %s587_s10 = sphi %s635_s10, %s870_s10   ;;  %s583_s9 = sphi %s633_s9, %s869_s9   ;;  %s579_s8 = sphi %s631_s8, %s868_s8   ;;  %s575_s7 = sphi %s629_s7, %s867_s7   ;;  %s571_s6 = sphi %s627_s6, %s866_s6  }
   0xa   : > { %s26_s19 = sadd.s32 1, %s603_s14  ;;  %s29_s20 = sadd.s32 1, %s607_s15 }
   0xb   : > { %p27_p0 = scmp.ge.s32.totalorder %s26_s19, 2  ;;  %s38_s21 = sadd.s32 1, %s591_s11 }
   0xc   : > { %p45_p1 = scmp.ne.s32.totalorder %s591_s11, %s587_s10  ;;  %p46_p2 = scmp.eq.s32.totalorder %s611_s16, 0 }
   0xd   : > { %s877_s19 = smov (%p27_p0, %s26_s19), 0  ;;  %s879_s20 = smov (!%p27_p0, %s29_s20), %s607_s15 }
   0xe   : > { %s34_s22 = ssub.s32 %s603_s14, %s877_s19  ;;  %p693_p3 = por %p46_p2, %p45_p1 }
   0xf   : > { %p31_p4 = scmp.ge.s32.totalorder %s879_s20, 2  ;;  %p51_p5 = scmp.ne.s32.totalorder %s587_s10, %s583_s9 }
  0x10   : > { %p52_p6 = scmp.eq.s32.totalorder %s337_s17, 0  ;;  %s64_s24 = sadd.s32 1, %s579_s8 }
  0x11   : > { %s881_s20 = smov (%p31_p4, %s879_s20), 0  ;;  %p74_p8 = scmp.ne.s32.totalorder %s579_s8, %s575_s7 }
  0x12   : > { %p701_p7 = por %p52_p6, %p51_p5  ;;  %s33_s26 = ssub.s32 %s607_s15, %s881_s20 }
  0x13   : > { %p75_p9 = scmp.eq.s32.totalorder %s337_s17, 3  ;;  %s35_s27 = sor.u32 %s34_s22, %s33_s26 }
  0x14   : > { %p62_p10 = scmp.eq.s32.totalorder %s33_s26, 0  ;;  %p36_p11 = scmp.eq.s32.totalorder %s35_s27, 0 }
  0x15   : > { %p709_p12 = por %p75_p9, %p74_p8  ;;  %p80_p13 = scmp.ne.s32.totalorder %s575_s7, %s571_s6 }
  0x16   : > { %s714_s29 = scalar_select %p62_p10, %s579_s8, %s64_s24  }
  0x17   : > { %s859_s28 = scalar_select %p709_p12, 1, 0 }
  0x18   : > { %s717_s30 = scalar_select %p36_p11, %s591_s11, %s38_s21  }
  0x19   : > { %p81_p0 = scmp.eq.s32.totalorder %s338_s18, 3  ;;  %p367_p1 = scmp.lt.s32.totalorder %s611_s16, 4 }
  0x1a   : > { %s101_s3 = sand.u32 1, %s591_s11   ;;  %s342_s5 = sshll.u32 %s607_s15, 1 }
  0x1b   : > { %p722_p2 = por %p81_p0, %p80_p13  ;;  %s341_s4 = sshll.u32 %s101_s3, 2 }
  0x1c   : > { %s110_s9 = sadd.s32 %s603_s14, %s342_s5  ;;  %s105_s17 = scalar_lea.vmem [#allocation3], %s341_s4 }
  0x1d   : > { %s860_s2 = scalar_select %p722_p2, 1, 0 }
  0x1e   : > { %s114_s22 = sshll.u32 %s105_s17, 4  ;;  %s343_s26 = sshll.u32 %s110_s9, 6  ;;  %s729_s22 = int_to_ptr.vmem [resolvable:$true] %s114_s22 }
  0x1f   : > { %s734_s27 = scalar_lea.hbm %s854_s0, %s343_s26  ;;  %p738_p4 = pnand %p367_p1, %p693_p3 }
  0x20   : > { %s102_s4 = scalar_lea.sflag [#allocation4], %s101_s3  ;;  %s459_s5 = scalar_lea.hbm %s734_s27, 64 }
  0x21   : > { %p460_p8 = scmp.ne.s32.totalorder %s734_s27, %s459_s5  ;;  %p461_p9 = pneg %p738_p4 }
  0x22   : > { %s464_s17 = scalar_lea.hbm %s854_s0, 256  ;;  %p465_p3 = scmp.lt.u32.totalorder %s734_s27, %s854_s0 }
  0x23   : > { %p462_p10 = pnand %p461_p9, %p460_p8  ;;  %p466_p13 = scmp.lt.u32.totalorder %s464_s17, %s459_s5 }
  0x24   : > { %p468_p1 = scmp.lt.u32.totalorder %s459_s5, %s734_s27 }
  0x25   : > { %p463_p11 = pneg %p462_p10  ;;  %p467_p0 = por %p466_p13, %p465_p3 }
  0x27   : > { %p469_p5 = por %p468_p1, %p467_p0 }
  0x29   : > { %p470_p6 = pnand %p469_p5, %p463_p11 }
  0x2b   : > { %473 = shalt.err (!%p470_p6)
}
  0x2c   : > { %s474_s3 = scalar_lea.vmem %s729_s22, 64  ;;  %s613_s21 = smov [#allocation3]  }
  0x2d   : > { %p475_p8 = scmp.ne.s32.totalorder %s729_s22, %s474_s3  ;;  %s479_s23 = sshll.u32 %s613_s21, 4  ;;  %s480_s23 = int_to_ptr.vmem [resolvable:$false] %s479_s23 }
  0x2e   : > { %s481_s9 = scalar_lea.vmem %s480_s23, 128  ;;  %p482_p12 = scmp.lt.s32.totalorder %s729_s22, %s480_s23 }
  0x2f   : > { %p477_p10 = pnand %p475_p8, %p461_p9  ;;  %p483_p3 = scmp.lt.s32.totalorder %s481_s9, %s474_s3 }
  0x31   : > { %p478_p2 = pneg %p477_p10  ;;  %p484_p13 = por %p483_p3, %p482_p12 }
  0x33   : > { %p485_p0 = pnand %p484_p13, %p478_p2 }
  0x35   : > { %488 = shalt.err (!%p485_p0)
}
  0x36   : > { %362 = dma.hbm_to_vmem [thread:$0]  (!%p738_p4), %s734_s27, 64, %s729_s22, %s102_s4  }
  0x37   : > { %p862_p5 = scmp.lt.s32.totalorder %s611_s16, 5  ;;  %p863_p6 = scmp.ge.s32.totalorder %s611_s16, 1 }
  0x39   : > { %p120_p9 = pnand %p863_p6, %p862_p5 }
  0x3a   : > { %s125_s5 = sand.u32 (!%p120_p9), 1, %s587_s10  }
  0x3b   : > { %123 = sbr.rel (%p120_p9) target bundleno = 279 (0x117), region = 24  ;;  %s345_s17 = sshll.u32 (!%p120_p9), %s125_s5, 2 }
  0x3c   : > { %s126_s26 = scalar_lea.sflag (!%p120_p9), [#allocation4], %s125_s5  ;;  %s129_s24 = scalar_lea.vmem (!%p120_p9), [#allocation3], %s345_s17 }
  0x42   : > { %562 = dma.done.wait (%p701_p7), %s126_s26, 64  }
  0x43   : > { %564 = vsyncadd (%p701_p7), %s126_s26, 4294967232  ;;  %s145_s18 = sand.u32 1, %s575_s7   ;;  %p347_p12 = scmp.ne.s32.totalorder %s595_s12, 0 }
  0x44   : > { %s781_s22 = sshll.u32 %s145_s18, 2  ;;  %vm152_vm0 = vcmask (!%p347_p12), 24576   ;;  %v614_v0 = vmov (!%p347_p12), -inf   ;;  %v615_v1 = vmov (!%p347_p12), 0.0  }
  0x45   : > { %s147_s27 = scalar_lea.vmem [#allocation6], %s781_s22  ;;  %151 = sbr.rel (%p347_p12) target bundleno = 76 (0x4c), region = 32  ;;  %153 = vst.msk [vmem:[#allocation2] sm:$0x1] (!%p347_p12), %vm152_vm0, %v614_v0  ;;  %154 = vst.msk [vmem:[#allocation2 + $0x1] sm:$0x1] (!%p347_p12), %vm152_vm0, %v614_v0 }
  0x46   : > { %155 = vst.msk [vmem:[#allocation2 + $0x2] sm:$0x1] (!%p347_p12), %vm152_vm0, %v615_v1  ;;  %156 = vst.msk [vmem:[#allocation2 + $0x3] sm:$0x1] (!%p347_p12), %vm152_vm0, %v615_v1 }
  0x4c PF: > { %v157_v2 = vld [vmem:[%s129_s24] sm:$0xf]  ;;  %vm158_vm1 = vcmask 1043456   ;;  %p348_p7 = scmp.ge.s32.totalorder %s595_s12, 1 }
  0x4d   : > { %v159_v3 = vsel %vm158_vm1, %v157_v2, -inf  ;;  %v162_v4 = vsel %vm158_vm1, %v157_v2, 0.0  ;;  %v171_v7 = vlaneseq (!%p348_p7)  ;;  %v169_v11 = vld [vmem:[#allocation2] sm:$0x1] (!%p348_p7)  ;;  %v181_v12 = vld [vmem:[#allocation2 + $0x2] sm:$0x1] (!%p348_p7) }
  0x4e   : > { %160 = vmax.xlane.f32.xlu0 %v159_v3  ;;  %vm179_vm2 = vcmask (!%p348_p7), 24576  }
  0x4f   : > { %v172_v8 = vand.u32 (!%p348_p7), 127, %v171_v7  ;;  %v174_v9 = vshrl.u32 (!%p348_p7), %v171_v7, 7 }
  0x51   : > { %v175_v10 = vsub.s32 (!%p348_p7), %v172_v8, %v174_v9 }
  0x52   : > { %163 = vadd.xlane.f32.xlu0 %v162_v4 }
  0xd9   : > { %168 = sbr.rel (%p348_p7) target bundleno = 229 (0xe5), region = 36 }
  0xdb   : > { %v161_v5 = vpop.xlane.xlu0 %160 }
  0xdc   : > { %v176_v13 = vrot.slane (!%p348_p7), %v161_v5, %v175_v10 }
  0xde   : > { %v178_v15 = vmax.f32 (!%p348_p7), %v169_v11, %v176_v13 }
  0xdf   : > { %v164_v6 = vpop.xlane.xlu0 %163 }
  0xe0   : > { %v186_v14 = vrot.slane %v164_v6, %v175_v10  ;;  %180 = vst.msk [vmem:[#allocation2] sm:$0x1] %vm179_vm2, %v178_v15 }
  0xe2   : > { %v188_v16 = vadd.f32 %v186_v14, %v181_v12 }
  0xe4   : > { %189 = vst.msk [vmem:[#allocation2 + $0x2] sm:$0x1] %vm179_vm2, %v188_v16 }
  0xe5 PF: > { %p349_p2 = scmp.lt.s32.totalorder %s595_s12, 1 }
  0xe6   : > { %v196_v17 = vlaneseq (!%p349_p2)  ;;  %v194_v21 = vld [vmem:[#allocation2 + $0x1] sm:$0x1] (!%p349_p2)  ;;  %v206_v22 = vld [vmem:[#allocation2 + $0x3] sm:$0x1] (!%p349_p2)  ;;  %vm204_vm3 = vcmask (!%p349_p2), 24576  }
  0xe7   : > { %193 = sbr.rel (%p349_p2) target bundleno = 241 (0xf1), region = 40 }
  0xe8   : > { %v197_v18 = vand.u32 (!%p349_p2), 127, %v196_v17  ;;  %v199_v19 = vshrl.u32 (!%p349_p2), %v196_v17, 7 }
  0xea   : > { %v200_v20 = vsub.s32 (!%p349_p2), %v197_v18, %v199_v19 }
  0xec   : > { %v201_v23 = vrot.slane (!%p349_p2), %v161_v5, %v200_v20  ;;  %v211_v24 = vrot.slane (!%p349_p2), %v164_v6, %v200_v20 }
  0xee   : > { %v203_v25 = vmax.f32 %v194_v21, %v201_v23  ;;  %v213_v26 = vadd.f32 %v211_v24, %v206_v22 }
  0xf0   : > { %205 = vst.msk [vmem:[#allocation2 + $0x1] sm:$0x1] %vm204_vm3, %v203_v25  ;;  %214 = vst.msk [vmem:[#allocation2 + $0x3] sm:$0x1] %vm204_vm3, %v213_v26 }
  0xf1 PF: > { %p350_p4 = scmp.ne.s32.totalorder %s595_s12, 1 }
  0xf2   : > { %v219_v27 = vld [vmem:[#allocation2] sm:$0x1] (!%p350_p4)  ;;  %v221_v29 = vld [vmem:[#allocation2 + $0x2] sm:$0x1] (!%p350_p4)  ;;  %vm232_vm4 = vcmask (!%p350_p4), 1040384   ;;  %vm234_vm5 = vcmask (!%p350_p4), 1041408  }
  0xf3   : > { %218 = sbr.rel (%p350_p4) target bundleno = 254 (0xfe), region = 44  ;;  %v227_v32 = vrot.slane (!%p350_p4), %v221_v29, 6  ;;  %vm236_vm6 = vcmask (!%p350_p4), 1042432   ;;  %vm238_vm7 = vcmask (!%p350_p4), 27648  }
  0xf7   : > { %v220_v28 = vld [vmem:[#allocation2 + $0x1] sm:$0x1] (!%p350_p4)  ;;  %v222_v30 = vld [vmem:[#allocation2 + $0x3] sm:$0x1] (!%p350_p4) }
  0xf8   : > { %v224_v31 = vrot.slane (!%p350_p4), %v220_v28, 7  ;;  %v230_v33 = vrot.slane (!%p350_p4), %v222_v30, 5 }
  0xfa   : > { %v233_v34 = vsel %vm232_vm4, %v219_v27, %v224_v31 }
  0xfb   : > { %v235_v35 = vsel %vm234_vm5, %v233_v34, %v227_v32 }
  0xfc   : > { %v237_v36 = vsel %vm236_vm6, %v235_v35, %v230_v33 }
  0xfd   : > { %239 = vst.msk [vmem:[%s147_s27] sm:$0xf] %vm238_vm7, %v237_v36 }
  0xfe PF: > { %s352_s12 = sshll.u32 %s599_s13, 6  ;;  %s254_s21 = sshll.u32 %s147_s27, 4  ;;  %s255_s21 = int_to_ptr.vmem [resolvable:$true] %s254_s21 }
  0xff   : > { %s794_s3 = scalar_lea.hbm %s855_s1, %s352_s12  ;;  %s241_s23 = scalar_lea.sflag [#allocation5], %s145_s18 }
 0x100   : > { %s489_s9 = scalar_lea.vmem %s255_s21, 64  ;;  %p864_p1 = scmp.ne.s32.totalorder %s859_s28, 0 }
 0x101   : > { %p490_p11 = scmp.ne.s32.totalorder %s255_s21, %s489_s9  ;;  %s616_s5 = smov [#allocation6]  }
 0x102   : > { %s493_s17 = sshll.u32 %s616_s5, 4  ;;  %s494_s17 = int_to_ptr.vmem [resolvable:$false] %s493_s17 }
 0x103   : > { %p491_p8 = pnand %p490_p11, %p864_p1  ;;  %s495_s26 = scalar_lea.vmem %s494_s17, 128 }
 0x104   : > { %p496_p3 = scmp.lt.s32.totalorder %s255_s21, %s494_s17  ;;  %p497_p13 = scmp.lt.s32.totalorder %s495_s26, %s489_s9 }
 0x105   : > { %p492_p10 = pneg %p491_p8 }
 0x106   : > { %p498_p0 = por %p497_p13, %p496_p3 }
 0x108   : > { %p499_p5 = pnand %p498_p0, %p492_p10 }
 0x10a   : > { %502 = shalt.err (!%p499_p5)
}
 0x10b   : > { %s503_s13 = scalar_lea.hbm %s794_s3, 64  ;;  %s507_s22 = scalar_lea.hbm %s855_s1, 128 }
 0x10c   : > { %p504_p6 = scmp.ne.s32.totalorder %s794_s3, %s503_s13  ;;  %p508_p7 = scmp.lt.u32.totalorder %s794_s3, %s855_s1 }
 0x10d   : > { %p509_p2 = scmp.lt.u32.totalorder %s507_s22, %s503_s13  ;;  %p511_p11 = scmp.lt.u32.totalorder %s503_s13, %s794_s3 }
 0x10e   : > { %p505_p9 = pnand %p504_p6, %p864_p1 }
 0x10f   : > { %p510_p4 = por %p509_p2, %p508_p7 }
 0x110   : > { %p506_p12 = pneg %p505_p9 }
 0x111   : > { %p512_p8 = por %p511_p11, %p510_p4 }
 0x113   : > { %p513_p10 = pnand %p512_p8, %p506_p12 }
 0x115   : > { %516 = shalt.err (!%p513_p10)
}
 0x116   : > { %357 = dma.vmem_to_hbm [thread:$0]  (%p864_p1), %s255_s21, 64, %s794_s3, %s241_s23  }
 0x117 PF: > { %p368_p3 = scmp.ge.s32.totalorder %s611_s16, 2  ;;  %s266_s25 = sand.u32 1, %s571_s6  }
 0x118   : > { %p865_p13 = scmp.ne.s32.totalorder %s860_s2, 0  ;;  %s267_s4 = scalar_lea.sflag [#allocation5], %s266_s25 }
 0x11a   : > { %p364_p0 = pnand %p368_p3, %p865_p13 }
 0x11c   : > { %566 = dma.done.wait (!%p364_p0), %s267_s4, 64  }
 0x11d   : > { %568 = vsyncadd (!%p364_p0), %s267_s4, 4294967232  ;;  %s17_s16 = sadd.s32 1, %s611_s16   ;;  %s866_s6 = smov %s575_s7 }
 0x11e   : > { %p14_p5 = scmp.ge.s32.totalorder %s17_s16, 6   ;;  %s867_s7 = smov %s579_s8 }
 0x11f   : > { %s868_s8 = smov %s714_s29  ;;  %s869_s9 = smov %s587_s10 }
 0x120   : > { %s870_s10 = smov %s591_s11  ;;  %s871_s11 = smov %s717_s30 }
 0x121   : > { %s872_s12 = smov %s603_s14  ;;  %s873_s13 = smov %s607_s15 }
 0x122   : > { %s874_s14 = smov %s877_s19  ;;  %s875_s15 = smov %s881_s20 }
 0x123   :  { %16 = sbr.rel (!%p14_p5) target bundleno = 9 (0x9), region = 85 }
 0x12a   :  { %272 = vsyncpa [#allocation4], 1 }
 0x12b   :  { %274 = vsyncpa [#allocation4 + $0x1], 1 }
 0x12c   :  { %275 = vsyncpa [#allocation5], 1 }
 0x12d   :  { %277 = vsyncpa [#allocation5 + $0x1], 1 }

</bundles_post_ra>
